<compile_context>
chip_gen: v5e
topology: v5e:2x2
jax: 0.10.0
libtpu: 0.0.40
codegen_flags: <defaults>
</compile_context>

<pallas_src>
import jax
import jax.numpy as jnp
from jax.experimental import pallas as pl
from jax.experimental.pallas import tpu as pltpu


def _round_up(x, m):
    return ((x + m - 1) // m) * m


# ---------------------------------------------------------------------------
# Kernel 1 (fused): transposed-conv matmul + BN statistics accumulation.
#   x_ref     : (tm, Cin)      compute dtype (f32 or bf16)
#   w_ref     : (Cin, 4*Cout)  compute dtype, columns ordered (ki*2+kj)*Cout + co
#   y_ref     : (tm, 4*Cout)   y_dtype (bf16 by default) -- raw deconv output
#   stats_ref : (2, 4*Cout)    f32 per-parallel-chunk partials: row0=sum, row1=sum(x^2)
# Grid = (P, NB). The stats block index depends only on the parallel axis, so it
# stays VMEM-resident across the inner "arbitrary" axis and accumulates there.
# ---------------------------------------------------------------------------
def deconv_stats_kernel(x_ref, w_ref, y_ref, stats_ref):
    @pl.when(pl.program_id(1) == 0)
    def _():
        stats_ref[...] = jnp.zeros_like(stats_ref)

    acc = jnp.dot(x_ref[...], w_ref[...], preferred_element_type=jnp.float32)
    y_ref[...] = acc.astype(y_ref.dtype)
    # Two separate row updates (no concatenate -> no sublane shuffle).
    stats_ref[0:1, :] += jnp.sum(acc, axis=0, keepdims=True)
    stats_ref[1:2, :] += jnp.sum(acc * acc, axis=0, keepdims=True)


# ---------------------------------------------------------------------------
# Kernel 2: BatchNorm apply as a single streaming FMA (f32 compute, bf16 load).
#   y_ref : (tr, 4*Cout)  y_dtype
#   ss_ref: (2, 4*Cout)   f32, row0=scale, row1=shift (pre-tiled per column)
# ---------------------------------------------------------------------------
def bn_scale_shift_kernel(y_ref, ss_ref, o_ref):
    y = y_ref[...].astype(jnp.float32)
    o_ref[...] = y * ss_ref[0:1, :] + ss_ref[1:2, :]


def up_forward(x_nchw, w, b, gamma, beta, *, eps=1e-5,
               tile_m=1024,
               compute_dtype=jnp.bfloat16,
               y_dtype=jnp.bfloat16,
               vmem_budget_bytes=40 * 1024 * 1024):
    """Pallas `up`: ConvTranspose2d(k=2, s=2) + BatchNorm2d (training-mode batch stats).

    Takes / returns NCHW exactly like the PyTorch module:
      x (N, Cin, H, W) -> out (N, Cout, 2H, 2W), float32.
    """
    N, Cin, H, W = x_nchw.shape
    Cout = w.shape[1]
    K4 = 4 * Cout
    M = N * H * W
    # The conv bias is a per-channel constant removed exactly by train-mode BN's
    # mean subtraction (NOT valid for eval-mode / running statistics).
    del b

    in_b = jnp.dtype(compute_dtype).itemsize
    y_b = jnp.dtype(y_dtype).itemsize

    # ---- row-tile size from a VMEM budget (keeps v7x's 64 MiB physical VMEM safe) ----
    fixed = 2 * Cin * K4 * in_b + 4 * 2 * K4 * 4 + 2 * 2 * K4 * 4   # weights (x2 buf) + stats + scale/shift
    per_row = max(
        2 * Cin * in_b + 2 * K4 * y_b + K4 * 4,   # kernel 1: x blk(x2) + y blk(x2) + f32 acc value
        2 * K4 * y_b + 2 * K4 * 4 + K4 * 4,       # kernel 2: y blk(x2) + out blk(x2) + f32 value
    )
    tm_cap = max(8, (max(0, vmem_budget_bytes - fixed)) // per_row)
    tm = min(int(tile_m), int(tm_cap))
    tm = max(8, (tm // 8) * 8)
    tm = min(tm, _round_up(M, 8))

    # ---- megacore split (v7x has 2 TensorCores); per-chunk stats partials keep it correct ----
    P = 2 if M > tm else 1
    NB = pl.cdiv(M, P * tm)
    M_pad = P * NB * tm            # zero-padded rows contribute 0 to the sums

    # ---- glue: NCHW -> flat NHWC rows; bf16 cast fused into the same XLA pass; zero-pad rows ----
    x_rows = jnp.transpose(x_nchw, (0, 2, 3, 1)).reshape(M, Cin).astype(compute_dtype)
    if M_pad != M:
        x_rows = jnp.pad(x_rows, ((0, M_pad - M), (0, 0)))
    # weight: (Cin, Cout, 2, 2) -> (Cin, 2, 2, Cout) -> (Cin, 4*Cout); column = (ki*2+kj)*Cout + co.
    w_mat = jnp.transpose(w, (0, 2, 3, 1)).reshape(Cin, K4).astype(compute_dtype)

    est_k1 = fixed + tm * (2 * Cin * in_b + 2 * K4 * y_b + K4 * 4)
    vmem_limit1 = int(min(100 * 1024 * 1024,
                          max(32 * 1024 * 1024, est_k1 + 8 * 1024 * 1024)))

    # ---- fused deconv matmul + BN stats (single pass over the activation) ----
    y_rows, stats = pl.pallas_call(
        deconv_stats_kernel,
        out_shape=(jax.ShapeDtypeStruct((M_pad, K4), y_dtype),
                   jax.ShapeDtypeStruct((P, 2, K4), jnp.float32)),
        grid_spec=pltpu.PrefetchScalarGridSpec(
            num_scalar_prefetch=0,
            grid=(P, NB),
            in_specs=[
                pl.BlockSpec((tm, Cin), lambda p, i: (p * NB + i, 0)),
                pl.BlockSpec((Cin, K4), lambda p, i: (0, 0)),
            ],
            out_specs=[
                pl.BlockSpec((tm, K4), lambda p, i: (p * NB + i, 0)),
                pl.BlockSpec((None, 2, K4), lambda p, i: (p, 0, 0)),
            ],
        ),
        compiler_params=pltpu.CompilerParams(
            dimension_semantics=("parallel", "arbitrary"),
            vmem_limit_bytes=vmem_limit1),
    )(x_rows, w_mat)

    # ---- fold parallel partials and (ki,kj) groups into per-channel mean/var ----
    s = stats.sum(axis=0).reshape(2, 4, Cout).sum(axis=1)        # (2, Cout)
    cnt = jnp.float32(4 * M)                                     # true count = N * 2H * 2W
    mean = s[0] / cnt
    var = jnp.maximum(s[1] / cnt - mean * mean, 0.0)             # single-pass var, clamped
    scale = gamma.astype(jnp.float32) * jax.lax.rsqrt(var + eps)
    shift = beta.astype(jnp.float32) - mean * scale
    ss = jnp.stack([jnp.tile(scale, 4), jnp.tile(shift, 4)], axis=0)   # (2, K4)

    # ---- BatchNorm apply: streaming FMA over the (padded) row slab ----
    tr = tm
    est_k2 = 2 * 2 * K4 * 4 + tr * (2 * K4 * y_b + 2 * K4 * 4 + K4 * 4)
    vmem_limit2 = int(min(100 * 1024 * 1024,
                          max(32 * 1024 * 1024, est_k2 + 8 * 1024 * 1024)))
    out_rows = pl.pallas_call(
        bn_scale_shift_kernel,
        out_shape=jax.ShapeDtypeStruct((M_pad, K4), jnp.float32),
        grid_spec=pltpu.PrefetchScalarGridSpec(
            num_scalar_prefetch=0,
            grid=(M_pad // tr,),
            in_specs=[
                pl.BlockSpec((tr, K4), lambda i: (i, 0)),
                pl.BlockSpec((2, K4), lambda i: (0, 0)),
            ],
            out_specs=pl.BlockSpec((tr, K4), lambda i: (i, 0)),
        ),
        compiler_params=pltpu.CompilerParams(
            dimension_semantics=("parallel",),
            vmem_limit_bytes=vmem_limit2),
    )(y_rows, ss)

    # ---- glue: drop padding; 2x2 window scatter fused with the final NCHW permute (one pass) ----
    # out_rows[m, (ki,kj,co)] -> out[n, co, 2i+ki, 2j+kj]
    out = out_rows[:M].reshape(N, H, W, 2, 2, Cout)
    out = jnp.transpose(out, (0, 5, 1, 3, 2, 4)).reshape(N, Cout, 2 * H, 2 * W)
    return out


# ---------------------------------------------------------------------------
# Pure-JAX reference (same math, no Pallas) to sanity-check the kernels.
# ---------------------------------------------------------------------------
def up_reference(x_nchw, w, b, gamma, beta, *, eps=1e-5):
    N, Cin, H, W = x_nchw.shape
    Cout = w.shape[1]
    x_nhwc = jnp.transpose(x_nchw, (0, 2, 3, 1))
    # out[n, 2i+ki, 2j+kj, co] = sum_ci x[n,i,j,ci] * w[ci,co,ki,kj] + b[co]
    y = jnp.einsum("nijc,cokl->nijklo", x_nhwc, w)               # (N,H,W,2,2,Cout)
    y = y + b
    y = jnp.transpose(y, (0, 1, 3, 2, 4, 5)).reshape(N, 2 * H, 2 * W, Cout)
    mean = jnp.mean(y, axis=(0, 1, 2), keepdims=True)
    var = jnp.mean((y - mean) ** 2, axis=(0, 1, 2), keepdims=True)   # biased (train mode)
    y = (y - mean) / jnp.sqrt(var + eps) * gamma + beta
    return jnp.transpose(y, (0, 3, 1, 2))


if __name__ == "__main__":
    # Small shapes consistent with the module: ConvTranspose2d in->out, 2x upsample.
    N, Cin, Cout, H, W = 2, 8, 4, 16, 16

    key = jax.random.PRNGKey(0)
    kx, kw, kb, kg, kbt = jax.random.split(key, 5)

    x = jax.random.normal(kx, (N, Cin, H, W), dtype=jnp.float32)
    # ConvTranspose2d weight shape: (in_planes, out_planes, 2, 2)
    w = jax.random.normal(kw, (Cin, Cout, 2, 2), dtype=jnp.float32) * 0.1
    b = jax.random.normal(kb, (Cout,), dtype=jnp.float32) * 0.1
    gamma = 1.0 + 0.1 * jax.random.normal(kg, (Cout,), dtype=jnp.float32)
    beta = 0.1 * jax.random.normal(kbt, (Cout,), dtype=jnp.float32)

    ref = up_reference(x, w, b, gamma, beta)

    # Exact path (f32 matmul + f32 Y), small tile so the multi-block grid and the
    # megacore split (P=2) with per-chunk stats partials are actually exercised.
    out = up_forward(x, w, b, gamma, beta,
                     compute_dtype=jnp.float32, y_dtype=jnp.float32, tile_m=128)
    out = jax.block_until_ready(out)
    assert out.shape == (N, Cout, 2 * H, 2 * W), out.shape
    assert jnp.allclose(out, ref, atol=2e-4, rtol=2e-4), (
        float(jnp.max(jnp.abs(out - ref))))

    # Default performance path: bf16 matmul inputs + bf16 Y intermediate (f32 accumulate/stats).
    out_bf16 = jax.block_until_ready(up_forward(x, w, b, gamma, beta))
    assert out_bf16.shape == (N, Cout, 2 * H, 2 * W), out_bf16.shape
    assert jnp.allclose(out_bf16, ref, atol=7e-2, rtol=7e-2), (
        float(jnp.max(jnp.abs(out_bf16 - ref))))

    print("KERNEL_OK")
</pallas_src>

<mosaic_0001>
module attributes {stable_mosaic.version = 11 : i64} {
  func.func @deconv_stats_kernel(%arg0: i32, %arg1: i32, %arg2: memref<128x8xf32, #tpu.memory_space<vmem>>, %arg3: memref<8x16xf32, #tpu.memory_space<vmem>>, %arg4: memref<128x16xf32, #tpu.memory_space<vmem>>, %arg5: memref<1x2x16xf32, #tpu.memory_space<vmem>>) attributes {dimension_semantics = [#tpu.dimension_semantics<parallel>, #tpu.dimension_semantics<arbitrary>], iteration_bounds = array<i64: 2, 2>, scalar_prefetch = 0 : i64, scratch_operands = 0 : i64, tpu.core_type = #tpu.core_type<tc>, window_params = [{transform_indices = @transform_0, window_bounds = array<i64: 128, 8>}, {pipeline_mode = #tpu.pipeline_mode<synchronous>, transform_indices = @transform_1, window_bounds = array<i64: 8, 16>}, {transform_indices = @transform_2, window_bounds = array<i64: 128, 16>}, {transform_indices = @transform_3, window_bounds = array<i64: 1, 2, 16>}]} {
    %c0_i32 = arith.constant 0 : i32
    %0 = arith.cmpi eq, %arg1, %c0_i32 : i32
    %1 = arith.extui %0 : i1 to i32
    %c0_i32_0 = arith.constant 0 : i32
    %2 = arith.cmpi ne, %1, %c0_i32_0 : i32
    scf.if %2 {
      %cst_19 = arith.constant 0.000000e+00 : f32
      %24 = vector.broadcast %cst_19 : f32 to vector<2x16xf32>
      %c0_20 = arith.constant 0 : index
      %c0_21 = arith.constant 0 : index
      %c0_22 = arith.constant 0 : index
      %25 = vector.load %arg5[%c0_20, %c0_21, %c0_22] : memref<1x2x16xf32, #tpu.memory_space<vmem>>, vector<1x2x16xf32>
      %26 = vector.shape_cast %25 : vector<1x2x16xf32> to vector<2x16xf32>
      %27 = vector.shape_cast %24 : vector<2x16xf32> to vector<1x2x16xf32>
      tpu.vector_store %arg5[%c0_20, %c0_21, %c0_22], %27 {strides = array<i32>} : memref<1x2x16xf32, #tpu.memory_space<vmem>>, vector<1x2x16xf32>,
    } else {
    }
    %c0 = arith.constant 0 : index
    %c0_1 = arith.constant 0 : index
    %3 = vector.load %arg2[%c0, %c0_1] : memref<128x8xf32, #tpu.memory_space<vmem>>, vector<128x8xf32>
    %c0_2 = arith.constant 0 : index
    %c0_3 = arith.constant 0 : index
    %4 = vector.load %arg3[%c0_2, %c0_3] : memref<8x16xf32, #tpu.memory_space<vmem>>, vector<8x16xf32>
    %cst = arith.constant dense<0.000000e+00> : vector<128x16xf32>
    %5 = tpu.matmul %3, %4, %cst {dimension_numbers = #tpu.dot_dimension_numbers<[1], [0], [0], [1], [0, 0, 1, 1], [], []>} : vector<128x8xf32>, vector<8x16xf32>, vector<128x16xf32> -> vector<128x16xf32>
    %c0_4 = arith.constant 0 : index
    %c0_5 = arith.constant 0 : index
    %6 = vector.load %arg4[%c0_4, %c0_5] : memref<128x16xf32, #tpu.memory_space<vmem>>, vector<128x16xf32>
    tpu.vector_store %arg4[%c0_4, %c0_5], %5 {strides = array<i32>} : memref<128x16xf32, #tpu.memory_space<vmem>>, vector<128x16xf32>,
    %c0_6 = arith.constant 0 : index
    %c0_7 = arith.constant 0 : index
    %c0_8 = arith.constant 0 : index
    %7 = vector.load %arg5[%c0_6, %c0_7, %c0_8] : memref<1x2x16xf32, #tpu.memory_space<vmem>>, vector<1x1x16xf32>
    %8 = vector.shape_cast %7 : vector<1x1x16xf32> to vector<1x16xf32>
    %cst_9 = arith.constant dense<0.000000e+00> : vector<16xf32>
    %9 = vector.multi_reduction <add>, %5, %cst_9 [0] : vector<128x16xf32> to vector<16xf32>
    %10 = vector.shape_cast %9 : vector<16xf32> to vector<1x16xf32>
    %11 = arith.addf %8, %10 : vector<1x16xf32>
    %c0_10 = arith.constant 0 : index
    %c0_11 = arith.constant 0 : index
    %c0_12 = arith.constant 0 : index
    %12 = vector.load %arg5[%c0_10, %c0_11, %c0_12] : memref<1x2x16xf32, #tpu.memory_space<vmem>>, vector<1x1x16xf32>
    %13 = vector.shape_cast %12 : vector<1x1x16xf32> to vector<1x16xf32>
    %14 = vector.shape_cast %11 : vector<1x16xf32> to vector<1x1x16xf32>
    tpu.vector_store %arg5[%c0_10, %c0_11, %c0_12], %14 {strides = array<i32>} : memref<1x2x16xf32, #tpu.memory_space<vmem>>, vector<1x1x16xf32>,
    %c0_13 = arith.constant 0 : index
    %c1 = arith.constant 1 : index
    %c0_14 = arith.constant 0 : index
    %15 = vector.load %arg5[%c0_13, %c1, %c0_14] : memref<1x2x16xf32, #tpu.memory_space<vmem>>, vector<1x1x16xf32>
    %16 = vector.shape_cast %15 : vector<1x1x16xf32> to vector<1x16xf32>
    %17 = arith.mulf %5, %5 : vector<128x16xf32>
    %cst_15 = arith.constant dense<0.000000e+00> : vector<16xf32>
    %18 = vector.multi_reduction <add>, %17, %cst_15 [0] : vector<128x16xf32> to vector<16xf32>
    %19 = vector.shape_cast %18 : vector<16xf32> to vector<1x16xf32>
    %20 = arith.addf %16, %19 : vector<1x16xf32>
    %c0_16 = arith.constant 0 : index
    %c1_17 = arith.constant 1 : index
    %c0_18 = arith.constant 0 : index
    %21 = vector.load %arg5[%c0_16, %c1_17, %c0_18] : memref<1x2x16xf32, #tpu.memory_space<vmem>>, vector<1x1x16xf32>
    %22 = vector.shape_cast %21 : vector<1x1x16xf32> to vector<1x16xf32>
    %23 = vector.shape_cast %20 : vector<1x16xf32> to vector<1x1x16xf32>
    tpu.vector_store %arg5[%c0_16, %c1_17, %c0_18], %23 {strides = array<i32>} : memref<1x2x16xf32, #tpu.memory_space<vmem>>, vector<1x1x16xf32>,
    return
  }
  func.func @transform_0(%arg0: i32, %arg1: i32) -> (i32, i32) {
    %c2_i32 = arith.constant 2 : i32
    %0 = arith.muli %arg0, %c2_i32 : i32
    %1 = arith.addi %0, %arg1 : i32
    %c0_i32 = arith.constant 0 : i32
    %c0_i32_0 = arith.constant 0 : i32
    return %1, %c0_i32 : i32, i32
  }
  func.func @transform_1(%arg0: i32, %arg1: i32) -> (i32, i32) {
    %c0_i32 = arith.constant 0 : i32
    %c0_i32_0 = arith.constant 0 : i32
    %c0_i32_1 = arith.constant 0 : i32
    return %c0_i32, %c0_i32_0 : i32, i32
  }
  func.func @transform_2(%arg0: i32, %arg1: i32) -> (i32, i32) {
    %c2_i32 = arith.constant 2 : i32
    %0 = arith.muli %arg0, %c2_i32 : i32
    %1 = arith.addi %0, %arg1 : i32
    %c0_i32 = arith.constant 0 : i32
    %c0_i32_0 = arith.constant 0 : i32
    return %1, %c0_i32 : i32, i32
  }
  func.func @transform_3(%arg0: i32, %arg1: i32) -> (i32, i32, i32) {
    %c0_i32 = arith.constant 0 : i32
    %c0_i32_0 = arith.constant 0 : i32
    %c0_i32_1 = arith.constant 0 : i32
    return %arg0, %c0_i32, %c0_i32_0 : i32, i32, i32
  }
}

</mosaic_0001>

<bundles_post_ra>
// kernel: tpu_custom_call.1
= control target key start
LH: loop header
LB: loop body
LE: loop exit
PB: predicated region body
PF: predicated region fallthrough
CT: control target
= control target key end

     0   :  { %9 = vsyncpa [#allocation3], 0  ;;  %s1078_s0 = inlined_call_operand.vmem [shape: f32[512,8], index: 0, kind: input, shape index: {}]   ;;  %s1079_s1 = inlined_call_operand.vmem [shape: f32[8,16], index: 1, kind: input, shape index: {}]   ;;  %s1080_s2 = inlined_call_operand.vmem [shape: f32[512,16], index: 2, kind: output, shape index: {0}]   ;;  %s1081_s3 = inlined_call_operand.hbm [shape: f32[2,2,16], index: 3, kind: output, shape index: {1}]  }
   0x1   :  { %11 = vsyncpa [#allocation3 + $0x1], 0  ;;  %s827_s12 = smov 0   ;;  %s829_s13 = smov 0  }
   0x2   :  { %s831_s14 = smov 0   ;;  %s833_s15 = smov 0  }
   0x3   :  { %s835_s16 = smov 0   ;;  %s837_s17 = smov 0  }
   0x4   :  { %s839_s18 = smov 0   ;;  %s841_s19 = smov 0  }
   0x5 LB: > { %s598_s20 = sadd.s32 4294967295, %s804_s19   ;;  %s599_s21 = sadd.s32 4294967294, %s804_s19   ;;  %s804_s19 = sphi %s841_s19, %s17_s19   ;;  %s800_s18 = sphi %s839_s18, %s1090_s18   ;;  %s796_s17 = sphi %s837_s17, %s1089_s17   ;;  %s792_s16 = sphi %s835_s16, %s1088_s16   ;;  %s788_s15 = sphi %s833_s15, %s1087_s15   ;;  %s784_s14 = sphi %s831_s14, %s1086_s14   ;;  %s780_s13 = sphi %s829_s13, %s1085_s13   ;;  %s776_s12 = sphi %s827_s12, %s1084_s12  }
   0x6   : > { %s26_s22 = sadd.s32 1, %s796_s17  ;;  %s29_s23 = sadd.s32 1, %s800_s18 }
   0x7   : > { %p27_p0 = scmp.ge.s32.totalorder %s26_s22, 2  ;;  %p127_p1 = scmp.ne.s32.totalorder %s784_s14, %s780_s13 }
   0x8   : > { %p128_p2 = scmp.eq.s32.totalorder %s598_s20, 3  ;;  %p133_p4 = scmp.ne.s32.totalorder %s780_s13, %s776_s12 }
   0x9   : > { %s1092_s22 = smov (%p27_p0, %s26_s22), 0  ;;  %s1094_s23 = smov (!%p27_p0, %s29_s23), %s800_s18 }
   0xa   : > { %p876_p3 = por %p128_p2, %p127_p1  ;;  %p31_p5 = scmp.ge.s32.totalorder %s1094_s23, 2 }
   0xb   : > { %p134_p6 = scmp.eq.s32.totalorder %s599_s21, 3  ;;  %p606_p7 = scmp.ge.s32.totalorder %s804_s19, 1 }
   0xc   : > { %p168_p8 = scmp.lt.s32.totalorder %s804_s19, 5  ;;  %s1096_s23 = smov (%p31_p5, %s1094_s23), 0 }
   0xd   : > { %p886_p9 = por %p134_p6, %p133_p4  ;;  %s114_s26 = ssub.s32 %s800_s18, %s1096_s23 }
   0xe   : > { %p169_p10 = pnand %p606_p7, %p168_p8  ;;  %s117_s27 = sadd.s32 1, %s784_s14 }
   0xf   : > { %p115_p11 = scmp.eq.s32.totalorder %s114_s26, 0  ;;  %s198_s29 = sand.u32 (!%p169_p10), 1, %s780_s13  }
  0x10   : > { %172 = sbr.rel (%p169_p10) target bundleno = 227 (0xe3), region = 28  ;;  %s608_s30 = sshll.u32 (!%p169_p10), %s792_s16, 1 }
  0x11   : > { %s894_s28 = scalar_select %p115_p11, %s784_s14, %s117_s27  }
  0x12   : > { %s607_s4 = sshll.u32 (!%p169_p10), %s198_s29, 1  ;;  %s202_s5 = sadd.s32 (!%p169_p10), %s788_s15, %s608_s30 }
  0x13   : > { %s609_s6 = sshll.u32 (!%p169_p10), %s202_s5, 4  ;;  %s913_s26 = scalar_lea.vmem (!%p169_p10), [#allocation2], %s607_s4 }
  0x14   : > { %p204_p12 = scmp.lt.s32.totalorder (!%p169_p10), %s609_s6, 63  ;;  %p614_p13 = scmp.ne.s32.totalorder (!%p169_p10), %s788_s15, 0 }
  0x16   : > { %s1098_s6 = smov (!%p204_p12, %s609_s6), 63  ;;  %224 = sbr.rel (%p614_p13) target bundleno = 29 (0x1d), region = 32 }
  0x17   : > { %s610_s7 = sshll.u32 %s1098_s6, 3 }
  0x18   : > { %s906_s10 = scalar_lea.vmem %s1078_s0, %s610_s7  ;;  %s911_s21 = scalar_lea.vmem %s1080_s2, %s610_s7 }
  0x1b   : > { %vm225_vm0 = vcmask 123904   ;;  %v806_v0 = vmov 0.0  }
  0x1c   : > { %226 = vst.msk [vmem:[%s913_s26] sm:$0x3] %vm225_vm0, %v806_v0 }
  0x1d PF: > { %v243_v1 = vld [vmem:[%s1079_s1] sm:$0xff]  ;;  %vm244_vm1 = vcmask 64512   ;;  %v228_v6 = vld [vmem:[%s906_s10 + $0x8] sm:$0xff]  ;;  %v229_v10 = vld [vmem:[%s906_s10 + $0x10] sm:$0xff]  ;;  %vm358_vm2 = vcmask 130048   ;;  %s496_s6 = scalar_lea.hbm %s1081_s3, %s608_s30  ;;  %vm414_vm3 = vcmask 122880  }
  0x1e   : > { %v227_v2 = vld [vmem:[%s906_s10] sm:$0xff]  ;;  %308 = vmatpush.msra.mxu0 %v243_v1  ;;  %635 = vmatpush.msra.mxu1 %v243_v1  ;;  %v232_v7 = vld [vmem:[%s906_s10 + $0x28] sm:$0xff]  ;;  %v233_v11 = vld [vmem:[%s906_s10 + $0x30] sm:$0xff]  ;;  %s498_s7 = sshll.u32 %s913_s26, 4  ;;  %s500_s8 = sshll.u32 %s496_s6, 4  ;;  %s499_s7 = int_to_ptr.vmem [resolvable:$true] %s498_s7  ;;  %s501_s8 = int_to_ptr.hbm [resolvable:$true] %s500_s8 }
  0x1f   : > { %v231_v3 = vld [vmem:[%s906_s10 + $0x20] sm:$0xff]  ;;  %615 = vmatmul.msk.f32.vlgmr.msra.gmra.mxu0 %vm244_vm1, %v227_v2  ;;  %636 = vmatpush.msra.mxu2 %v243_v1  ;;  %v236_v8 = vld [vmem:[%s906_s10 + $0x48] sm:$0xff]  ;;  %v237_v12 = vld [vmem:[%s906_s10 + $0x50] sm:$0xff]  ;;  %s480_s16 = scalar_lea.sflag [#allocation3], %s198_s29  ;;  %s724_s9 = sshra.s32 %s501_s8, 4  ;;  %s725_s9 = int_to_ptr.hbm [resolvable:$true] %s724_s9 }
  0x20   : > { %v235_v4 = vld [vmem:[%s906_s10 + $0x40] sm:$0xff]  ;;  %619 = vmatmul.msk.f32.vlgmr.msra.gmra.mxu1 %vm244_vm1, %v231_v3  ;;  %637 = vmatpush.msra.mxu3 %v243_v1  ;;  %v240_v9 = vld [vmem:[%s906_s10 + $0x68] sm:$0xff]  ;;  %v241_v13 = vld [vmem:[%s906_s10 + $0x70] sm:$0xff]  ;;  %s726_s30 = scalar_lea.hbm %s725_s9, 2  ;;  %s730_s20 = scalar_lea.hbm %s1081_s3, 4 }
  0x21   : > { %v239_v5 = vld [vmem:[%s906_s10 + $0x60] sm:$0xff]  ;;  %623 = vmatmul.msk.f32.vlgmr.msra.gmra.mxu2 %vm244_vm1, %v235_v4  ;;  %v230_v14 = vld [vmem:[%s906_s10 + $0x18] sm:$0xff]  ;;  %p727_p0 = scmp.ne.s32.totalorder %s725_s9, %s726_s30  ;;  %p731_p4 = scmp.lt.s32.totalorder %s725_s9, %s1081_s3 }
  0x22   : > { %627 = vmatmul.msk.f32.vlgmr.msra.gmra.mxu3 %vm244_vm1, %v239_v5  ;;  %v234_v15 = vld [vmem:[%s906_s10 + $0x38] sm:$0xff]  ;;  %p732_p5 = scmp.lt.s32.totalorder %s730_s20, %s726_s30 }
  0x23   : > { %v238_v16 = vld [vmem:[%s906_s10 + $0x58] sm:$0xff]  ;;  %p728_p1 = pnand %p727_p0, %p876_p3 }
  0x24   : > { %v242_v17 = vld [vmem:[%s906_s10 + $0x78] sm:$0xff]  ;;  %p733_p6 = por %p732_p5, %p731_p4 }
  0x25   : > { %p729_p2 = pneg %p728_p1 }
  0x27   : > { %616 = vmatmul.msk.f32.gmra.mxu0 %vm244_vm1, %v228_v6  ;;  %p734_p7 = pnand %p733_p6, %p729_p2 }
  0x28   : > { %620 = vmatmul.msk.f32.gmra.mxu1 %vm244_vm1, %v232_v7 }
  0x29   : > { %624 = vmatmul.msk.f32.gmra.mxu2 %vm244_vm1, %v236_v8 }
  0x2a   : > { %628 = vmatmul.msk.f32.gmra.mxu3 %vm244_vm1, %v240_v9 }
  0x2f   : > { %617 = vmatmul.msk.f32.gmra.mxu0 %vm244_vm1, %v229_v10 }
  0x30   : > { %621 = vmatmul.msk.f32.gmra.mxu1 %vm244_vm1, %v233_v11 }
  0x31   : > { %625 = vmatmul.msk.f32.gmra.mxu2 %vm244_vm1, %v237_v12 }
  0x32   : > { %629 = vmatmul.msk.f32.gmra.mxu3 %vm244_vm1, %v241_v13 }
  0x37   : > { %618 = vmatmul.msk.f32.gmra.mxu0 %vm244_vm1, %v230_v14 }
  0x38   : > { %622 = vmatmul.msk.f32.gmra.mxu1 %vm244_vm1, %v234_v15 }
  0x39   : > { %626 = vmatmul.msk.f32.gmra.mxu2 %vm244_vm1, %v238_v16 }
  0x3a   : > { %630 = vmatmul.msk.f32.gmra.mxu3 %vm244_vm1, %v242_v17 }
  0x9c   : > { %v310_v18 = vpop.f32.mrf.mxu0 }
  0x9d   : > { %v322_v19 = vpop.f32.mrf.mxu1  ;;  %359 = vst.msk [vmem:[%s911_s21] sm:$0xff] %vm358_vm2, %v310_v18  ;;  %v417_v29 = vmul.f32 %v310_v18, %v310_v18  ;;  %v376_v32 = vsel %vm358_vm2, %v310_v18, 0.0 }
  0x9e   : > { %363 = vst.msk [vmem:[%s911_s21 + $0x20] sm:$0xff] %vm358_vm2, %v322_v19  ;;  %v421_v42 = vmul.f32 %v322_v19, %v322_v19  ;;  %v383_v49 = vsel %vm358_vm2, %v322_v19, 0.0 }
  0x9f   : > { %v433_v36 = vsel %vm358_vm2, %v417_v29, 0.0 }
  0xa0   : > { %v440_v54 = vsel %vm358_vm2, %v421_v42, 0.0 }
  0xa4   : > { %v313_v20 = vpop.f32.mrf.mxu0  ;;  %v334_v22 = vpop.f32.mrf.mxu2 }
  0xa5   : > { %v325_v21 = vpop.f32.mrf.mxu1  ;;  %360 = vst.msk [vmem:[%s911_s21 + $0x8] sm:$0xff] %vm358_vm2, %v313_v20  ;;  %v958_v23 = vpop.f32.mrf.mxu3  ;;  %v418_v26 = vmul.f32 %v313_v20, %v313_v20  ;;  %v377_v30 = vsel %vm358_vm2, %v313_v20, 0.0  ;;  %v425_v1 = vmul.f32 %v334_v22, %v334_v22  ;;  %v391_v8 = vsel %vm358_vm2, %v334_v22, 0.0 }
  0xa6   : > { %364 = vst.msk [vmem:[%s911_s21 + $0x28] sm:$0xff] %vm358_vm2, %v325_v21  ;;  %v378_v35 = vadd.f32 %v377_v30, %v376_v32  ;;  %v422_v50 = vmul.f32 %v325_v21, %v325_v21  ;;  %v385_v55 = vsel %vm358_vm2, %v325_v21, 0.0  ;;  %v399_v30 = vsel %vm358_vm2, %v958_v23, 0.0 }
  0xa7   : > { %367 = vst.msk [vmem:[%s911_s21 + $0x40] sm:$0xff] %vm358_vm2, %v334_v22  ;;  %v434_v33 = vsel %vm358_vm2, %v418_v26, 0.0  ;;  %v448_v12 = vsel %vm358_vm2, %v425_v1, 0.0 }
  0xa8   : > { %371 = vst.msk [vmem:[%s911_s21 + $0x60] sm:$0xff] %vm358_vm2, %v958_v23  ;;  %v435_v38 = vadd.f32 %v434_v33, %v433_v36  ;;  %v442_v60 = vsel %vm358_vm2, %v422_v50, 0.0 }
  0xac   : > { %v316_v24 = vpop.f32.mrf.mxu0  ;;  %v337_v27 = vpop.f32.mrf.mxu2 }
  0xad   : > { %v328_v25 = vpop.f32.mrf.mxu1  ;;  %361 = vst.msk [vmem:[%s911_s21 + $0x10] sm:$0xff] %vm358_vm2, %v316_v24  ;;  %v969_v28 = vpop.f32.mrf.mxu3  ;;  %v419_v31 = vmul.f32 %v316_v24, %v316_v24  ;;  %v379_v34 = vsel %vm358_vm2, %v316_v24, 0.0  ;;  %v426_v9 = vmul.f32 %v337_v27, %v337_v27  ;;  %v393_v13 = vsel %vm358_vm2, %v337_v27, 0.0 }
  0xae   : > { %365 = vst.msk [vmem:[%s911_s21 + $0x30] sm:$0xff] %vm358_vm2, %v328_v25  ;;  %v380_v39 = vadd.f32 %v379_v34, %v378_v35  ;;  %v423_v56 = vmul.f32 %v328_v25, %v328_v25  ;;  %v387_v61 = vsel %vm358_vm2, %v328_v25, 0.0  ;;  %v429_v24 = vmul.f32 %v958_v23, %v958_v23 }
  0xaf   : > { %368 = vst.msk [vmem:[%s911_s21 + $0x48] sm:$0xff] %vm358_vm2, %v337_v27  ;;  %v436_v37 = vsel %vm358_vm2, %v419_v31, 0.0  ;;  %v450_v18 = vsel %vm358_vm2, %v426_v9, 0.0  ;;  %v430_v31 = vmul.f32 %v969_v28, %v969_v28  ;;  %v401_v35 = vsel %vm358_vm2, %v969_v28, 0.0 }
  0xb0   : > { %372 = vst.msk [vmem:[%s911_s21 + $0x68] sm:$0xff] %vm358_vm2, %v969_v28  ;;  %v437_v47 = vadd.f32 %v436_v37, %v435_v38  ;;  %v444_v2 = vsel %vm358_vm2, %v423_v56, 0.0  ;;  %v456_v34 = vsel %vm358_vm2, %v429_v24, 0.0 }
  0xb4   : > { %v319_v40 = vpop.f32.mrf.mxu0  ;;  %v340_v45 = vpop.f32.mrf.mxu2 }
  0xb5   : > { %v331_v41 = vpop.f32.mrf.mxu1  ;;  %362 = vst.msk [vmem:[%s911_s21 + $0x18] sm:$0xff] %vm358_vm2, %v319_v40  ;;  %v381_v43 = vsel %vm358_vm2, %v319_v40, 0.0  ;;  %v420_v44 = vmul.f32 %v319_v40, %v319_v40  ;;  %v352_v46 = vpop.f32.mrf.mxu3  ;;  %v427_v14 = vmul.f32 %v340_v45, %v340_v45  ;;  %v395_v19 = vsel %vm358_vm2, %v340_v45, 0.0 }
  0xb6   : > { %v382_v48 = vadd.f32 %v381_v43, %v380_v39  ;;  %366 = vst.msk [vmem:[%s911_s21 + $0x38] sm:$0xff] %vm358_vm2, %v331_v41  ;;  %v424_v57 = vmul.f32 %v331_v41, %v331_v41  ;;  %v389_v62 = vsel %vm358_vm2, %v331_v41, 0.0  ;;  %v431_v36 = vmul.f32 %v352_v46, %v352_v46 }
  0xb7   : > { %v438_v51 = vsel %vm358_vm2, %v420_v44, 0.0  ;;  %369 = vst.msk [vmem:[%s911_s21 + $0x50] sm:$0xff] %vm358_vm2, %v340_v45  ;;  %v452_v25 = vsel %vm358_vm2, %v427_v14, 0.0  ;;  %v458_v40 = vsel %vm358_vm2, %v430_v31, 0.0  ;;  %v403_v41 = vsel %vm358_vm2, %v352_v46, 0.0 }
  0xb8   : > { %v384_v52 = vadd.f32 %v383_v49, %v382_v48  ;;  %v439_v53 = vadd.f32 %v438_v51, %v437_v47  ;;  %373 = vst.msk [vmem:[%s911_s21 + $0x70] sm:$0xff] %vm358_vm2, %v352_v46  ;;  %v446_v3 = vsel %vm358_vm2, %v424_v57, 0.0  ;;  %v460_v44 = vsel %vm358_vm2, %v431_v36, 0.0  ;;  %v375_v57 = vld [vmem:[%s913_s26] sm:$0x1] }
  0xba   : > { %v441_v58 = vadd.f32 %v440_v54, %v439_v53  ;;  %v386_v59 = vadd.f32 %v385_v55, %v384_v52 }
  0xbc   : > { %v388_v63 = vadd.f32 %v387_v61, %v386_v59  ;;  %v443_v0 = vadd.f32 %v442_v60, %v441_v58  ;;  %v343_v4 = vpop.f32.mrf.mxu2  ;;  %v416_v60 = vld [vmem:[%s913_s26 + $0x1] sm:$0x1] }
  0xbd   : > { %v355_v5 = vpop.f32.mrf.mxu3  ;;  %370 = vst.msk [vmem:[%s911_s21 + $0x58] sm:$0xff] %vm358_vm2, %v343_v4  ;;  %v428_v15 = vmul.f32 %v343_v4, %v343_v4  ;;  %v397_v20 = vsel %vm358_vm2, %v343_v4, 0.0 }
  0xbe   : > { %v445_v6 = vadd.f32 %v444_v2, %v443_v0  ;;  %v390_v7 = vadd.f32 %v389_v62, %v388_v63  ;;  %374 = vst.msk [vmem:[%s911_s21 + $0x78] sm:$0xff] %vm358_vm2, %v355_v5  ;;  %v432_v37 = vmul.f32 %v355_v5, %v355_v5  ;;  %v405_v23 = vsel %vm358_vm2, %v355_v5, 0.0 }
  0xbf   : > { %v454_v26 = vsel %vm358_vm2, %v428_v15, 0.0 }
  0xc0   : > { %v392_v10 = vadd.f32 %v391_v8, %v390_v7  ;;  %v447_v11 = vadd.f32 %v446_v3, %v445_v6  ;;  %v462_v45 = vsel %vm358_vm2, %v432_v37, 0.0 }
  0xc2   : > { %v449_v16 = vadd.f32 %v448_v12, %v447_v11  ;;  %v394_v17 = vadd.f32 %v393_v13, %v392_v10 }
  0xc4   : > { %v396_v21 = vadd.f32 %v395_v19, %v394_v17  ;;  %v451_v22 = vadd.f32 %v450_v18, %v449_v16 }
  0xc6   : > { %v453_v27 = vadd.f32 %v452_v25, %v451_v22  ;;  %v398_v29 = vadd.f32 %v397_v20, %v396_v21 }
  0xc8   : > { %v400_v32 = vadd.f32 %v399_v30, %v398_v29  ;;  %v455_v33 = vadd.f32 %v454_v26, %v453_v27 }
  0xca   : > { %v457_v38 = vadd.f32 %v456_v34, %v455_v33  ;;  %v402_v39 = vadd.f32 %v401_v35, %v400_v32 }
  0xcc   : > { %v404_v42 = vadd.f32 %v403_v41, %v402_v39  ;;  %v459_v43 = vadd.f32 %v458_v40, %v457_v38 }
  0xce   : > { %v461_v47 = vadd.f32 %v460_v44, %v459_v43  ;;  %v406_v28 = vadd.f32 %v405_v23, %v404_v42 }
  0xd0   : > { %v407_v48 = vrot.slane %v406_v28, 4  ;;  %v463_v49 = vadd.f32 %v462_v45, %v461_v47 }
  0xd2   : > { %v408_v50 = vadd.f32 %v407_v48, %v406_v28  ;;  %v464_v51 = vrot.slane %v463_v49, 4 }
  0xd4   : > { %v409_v52 = vrot.slane %v408_v50, 2  ;;  %v465_v46 = vadd.f32 %v464_v51, %v463_v49 }
  0xd6   : > { %v410_v53 = vadd.f32 %v409_v52, %v408_v50  ;;  %v466_v54 = vrot.slane %v465_v46, 2 }
  0xd8   : > { %v411_v55 = vrot.slane %v410_v53, 1  ;;  %v467_v56 = vadd.f32 %v466_v54, %v465_v46 }
  0xda   : > { %v412_v58 = vadd.f32 %v411_v55, %v410_v53  ;;  %v468_v59 = vrot.slane %v467_v56, 1 }
  0xdc   : > { %v469_v61 = vadd.f32 %v468_v59, %v467_v56  ;;  %v413_v62 = vadd.f32 %v412_v58, %v375_v57 }
  0xde   : > { %415 = vst.msk [vmem:[%s913_s26] sm:$0x1] %vm414_vm3, %v413_v62  ;;  %v470_v63 = vadd.f32 %v469_v61, %v416_v60 }
  0xe0   : > { %471 = vst.msk [vmem:[%s913_s26 + $0x1] sm:$0x1] %vm414_vm3, %v470_v63 }
  0xe1   : > { %737 = shalt.err (!%p734_p7)
}
  0xe2   : > { %638 = dma.vmem_to_hbm [thread:$0]  (%p876_p3), %s499_s7, 32, %s501_s8, %s480_s16  }
  0xe3 PF: > { %p644_p8 = scmp.ge.s32.totalorder %s804_s19, 2  ;;  %s522_s29 = sand.u32 1, %s776_s12  }
  0xe4   : > { %s523_s26 = scalar_lea.sflag [#allocation3], %s522_s29 }
  0xe5   : > { %p641_p10 = pnand %p644_p8, %p886_p9 }
  0xe7   : > { %p642_p11 = pneg %p641_p10 }
  0xe9   : > { %771 = dma.done.wait (%p642_p11), %s523_s26, 32  }
  0xea   : > { %773 = vsyncadd (%p642_p11), %s523_s26, 4294967264  ;;  %s17_s19 = sadd.s32 1, %s804_s19   ;;  %s1084_s12 = smov %s780_s13 }
  0xeb   : > { %p14_p12 = scmp.ge.s32.totalorder %s17_s19, 6   ;;  %s1085_s13 = smov %s784_s14 }
  0xec   : > { %s1086_s14 = smov %s894_s28  ;;  %s1087_s15 = smov %s796_s17 }
  0xed   : > { %s1088_s16 = smov %s800_s18  ;;  %s1089_s17 = smov %s1092_s22 }
  0xee   : > { %s1090_s18 = smov %s1096_s23  ;;  %16 = sbr.rel (!%p14_p12) target bundleno = 5 (0x5), region = 79 }
  0xf3   :  { %529 = vsyncpa [#allocation3], 1 }
  0xf4   :  { %531 = vsyncpa [#allocation3 + $0x1], 1 }

</bundles_post_ra>
